<compile_context>
chip_gen: v7x
topology: tpu7x:2x2x1
jax: 0.10.0
libtpu: 0.0.40
codegen_flags: <defaults>
</compile_context>

<pallas_src>
import jax
import jax.numpy as jnp
from jax.experimental import pallas as pl
from jax.experimental.pallas import tpu as pltpu

# ----------------------------- model config ---------------------------------
# embeddings_input = [(col, n_unique, emb_dim), ...]
EMBEDDINGS_INPUT = [("col_a", 10, 8), ("col_b", 12, 8)]
CONTINUOUS_COLS = ["col_c", "col_d"]
DEEP_COLUMN_IDX = {"col_a": 0, "col_b": 1, "col_c": 2, "col_d": 3}
WIDE_DIM = 16
HIDDEN_LAYERS = [32, 16]
N_CLASS = 1                      # logistic -> sigmoid output
BATCH = 200

D_EMB = [d for (_, _, d) in EMBEDDINGS_INPUT]      # [8, 8]
N_CONT = len(CONTINUOUS_COLS)                      # 2
D_DEEP = sum(D_EMB) + N_CONT                       # 18
H1, H2 = HIDDEN_LAYERS                             # 32, 16

# Row layout of the streamed activation slab (batch on lanes):
#   [0, WIDE_DIM)                  : wide features            (16 rows)
#   [WIDE_DIM, WIDE_DIM + D_DEEP)  : emb_a | emb_b | cont     (18 rows)
#   [WIDE_DIM + D_DEEP, F_PAD)     : zero padding
F_PAD = 48        # 34 -> 48 (multiple of 16: clean bf16 sublane packing)

# Packed f32 column of biases / output-neuron weights (offsets all mult. of 8):
OFF_B1 = 0
OFF_B2 = OFF_B1 + H1            # 32
OFF_WOD = OFF_B2 + H2           # 48
OFF_WOW = OFF_WOD + H2          # 64
OFF_BO = OFF_WOW + WIDE_DIM     # 80
P_ROWS = 88                     # 81 -> 88 (multiple of 8 f32 sublanes)


def _round_up(x, m):
    return (x + m - 1) // m * m


# ------------------------------ Pallas kernel --------------------------------
def _widedeep_kernel(x_ref, w_ref, p_ref, out_ref):
    """Fused deep MLP + wide/deep output neuron + sigmoid.

    x_ref: [F_PAD, TILE_B] bf16 activation slab (wide | deep | pad, batch on lanes)
    w_ref: [F_PAD, F_PAD] bf16 packed weights (rows 0:H1 = W1', rows H1:H1+H2 = W2^T)
    p_ref: [P_ROWS, 1] f32 packed b1 | b2 | w_out_deep | w_out_wide | b_out
    """
    x = x_ref[...]                                   # [48, TB] bf16
    w = w_ref[...]                                   # [48, 48] bf16
    p = p_ref[...]                                   # [88, 1]  f32

    w1 = w[0:H1, :]                                  # [H1, F_PAD]
    w2 = w[H1:H1 + H2, 0:H1]                         # [H2, H1]
    b1 = p[OFF_B1:OFF_B1 + H1, :]                    # [H1, 1]
    b2 = p[OFF_B2:OFF_B2 + H2, :]                    # [H2, 1]
    wod = p[OFF_WOD:OFF_WOD + H2, :]                 # [H2, 1]
    wow = p[OFF_WOW:OFF_WOW + WIDE_DIM, :]           # [WIDE_DIM, 1]
    bo = p[OFF_BO:OFF_BO + 1, :]                     # [1, 1]

    # ---- layer 1: single fused MXU matmul over the whole slab --------------
    # (wide / padding rows of the slab hit zero weight columns in W1')
    h1 = jnp.dot(w1, x, preferred_element_type=jnp.float32)        # [H1, TB]
    h1 = jnp.maximum(h1 + b1, 0.0)                                  # f32 VPU

    # ---- layer 2 (MXU, bf16 operands, f32 accumulation) --------------------
    h2 = jnp.dot(w2, h1.astype(jnp.bfloat16),
                 preferred_element_type=jnp.float32)                # [H2, TB]
    h2 = jnp.maximum(h2 + b2, 0.0)

    # ---- output neuron: width-1 "matmul" -> VPU mul + sublane (XLU) reduce -
    # cat([x_deep, X_w]) @ W_out == sum(h2 * w_deep) + sum(X_w * w_wide)
    wide = x[0:WIDE_DIM, :].astype(jnp.float32)                     # [16, TB]
    logit = jnp.sum(h2 * wod, axis=0, keepdims=True)                # [1, TB]
    logit = logit + jnp.sum(wide * wow, axis=0, keepdims=True)

    # 'logistic' activation (F.sigmoid) in f32 on EUP; lane-dense store.
    out_ref[...] = jax.nn.sigmoid(logit + bo)


# ------------------------------ forward wrapper -------------------------------
def widedeep_forward(x_wide, x_deep, params, *, tile_b=512):
    """Full forward pass.  Embedding gathers are glue; MLP is the kernel."""
    assert N_CLASS == 1
    B = x_deep.shape[0]
    # Harden: lane-aligned batch tile (multiple of 128).
    tile_b = _round_up(min(tile_b, _round_up(B, 128)), 128)
    n_tiles = pl.cdiv(B, tile_b)
    b_pad = n_tiles * tile_b
    # NOTE(v7x): for large batches prefer tile_b such that n_tiles is even so
    # the "parallel" batch axis shards across both TensorCores.

    # --- glue: gathers + one concat, then a single transpose/cast/pad --------
    emb = []
    for (col, _, _), table in zip(EMBEDDINGS_INPUT, params["emb_tables"]):
        idx = x_deep[:, DEEP_COLUMN_IDX[col]].astype(jnp.int32)
        emb.append(jnp.take(table, idx, axis=0))                    # [B, d]
    cont_idx = jnp.array([DEEP_COLUMN_IDX[c] for c in CONTINUOUS_COLS],
                         dtype=jnp.int32)
    cont = x_deep[:, cont_idx].astype(jnp.float32)                  # [B, n_cont]
    feat = jnp.concatenate([x_wide.astype(jnp.float32)] + emb + [cont],
                           axis=1)                                  # [B, 34]
    slab = jnp.pad(feat.T.astype(jnp.bfloat16),
                   ((0, F_PAD - feat.shape[1]), (0, b_pad - B)))    # [48, b_pad]

    # --- packed resident weights: W1' (deep cols at slab rows) + W2^T --------
    w1p = jnp.zeros((H1, F_PAD), jnp.float32)
    w1p = w1p.at[:, WIDE_DIM:WIDE_DIM + D_DEEP].set(params["w1"].T)
    w_pack = jnp.zeros((F_PAD, F_PAD), jnp.float32)
    w_pack = w_pack.at[0:H1, :].set(w1p)
    w_pack = w_pack.at[H1:H1 + H2, 0:H1].set(params["w2"].T)
    w_pack = w_pack.astype(jnp.bfloat16)

    # --- packed resident f32 column: b1 | b2 | w_out_deep | w_out_wide | b_out
    p_pack = jnp.zeros((P_ROWS, 1), jnp.float32)
    p_pack = p_pack.at[OFF_B1:OFF_B1 + H1, 0].set(params["b1"])
    p_pack = p_pack.at[OFF_B2:OFF_B2 + H2, 0].set(params["b2"])
    p_pack = p_pack.at[OFF_WOD:OFF_WOD + H2, 0].set(params["w_out_deep"][:, 0])
    p_pack = p_pack.at[OFF_WOW:OFF_WOW + WIDE_DIM, 0].set(params["w_out_wide"][:, 0])
    p_pack = p_pack.at[OFF_BO, 0].set(params["b_out"][0])

    out = pl.pallas_call(
        _widedeep_kernel,
        out_shape=jax.ShapeDtypeStruct((1, b_pad), jnp.float32),
        grid=(n_tiles,),
        in_specs=[
            pl.BlockSpec((F_PAD, tile_b), lambda i: (0, i)),   # streamed slab
            pl.BlockSpec((F_PAD, F_PAD), lambda i: (0, 0)),    # resident weights
            pl.BlockSpec((P_ROWS, 1), lambda i: (0, 0)),       # resident biases
        ],
        out_specs=pl.BlockSpec((1, tile_b), lambda i: (0, i)),
        compiler_params=pltpu.CompilerParams(
            dimension_semantics=("parallel",)),
    )(slab, w_pack, p_pack)

    return out[0, :B].reshape(B, N_CLASS)


# --------------------------- parameter initialization ------------------------
def init_params(key):
    ks = jax.random.split(key, 16)
    k_it = iter(ks)

    emb_tables = [jax.random.normal(next(k_it), (n, d), dtype=jnp.float32)
                  for (_, n, d) in EMBEDDINGS_INPUT]

    def linear(k, fan_in, fan_out):
        bound = 1.0 / jnp.sqrt(fan_in)
        kw, kb = jax.random.split(k)
        w = jax.random.uniform(kw, (fan_in, fan_out), jnp.float32, -bound, bound)
        b = jax.random.uniform(kb, (fan_out,), jnp.float32, -bound, bound)
        return w, b

    w1, b1 = linear(next(k_it), D_DEEP, H1)
    w2, b2 = linear(next(k_it), H1, H2)
    w_out, b_out = linear(next(k_it), H2 + WIDE_DIM, N_CLASS)

    return {
        "emb_tables": emb_tables,
        "w1": w1, "b1": b1,
        "w2": w2, "b2": b2,
        "w_out_deep": w_out[:H2, :],
        "w_out_wide": w_out[H2:, :],
        "b_out": b_out,
    }


# ------------------------------ references -----------------------------------
def reference_forward_f32(x_wide, x_deep, params):
    """Pure-f32 reference matching the torch forward semantics."""
    emb_list = []
    for (col, _, _), table in zip(EMBEDDINGS_INPUT, params["emb_tables"]):
        idx = x_deep[:, DEEP_COLUMN_IDX[col]].astype(jnp.int32)
        emb_list.append(jnp.take(table, idx, axis=0))
    cont_idx = jnp.array([DEEP_COLUMN_IDX[c] for c in CONTINUOUS_COLS],
                         dtype=jnp.int32)
    cont = x_deep[:, cont_idx].astype(jnp.float32)
    deep_inp = jnp.concatenate(emb_list + [cont], axis=1)
    x = jnp.maximum(deep_inp @ params["w1"] + params["b1"], 0.0)
    x = jnp.maximum(x @ params["w2"] + params["b2"], 0.0)
    wd = jnp.concatenate([x, x_wide.astype(jnp.float32)], axis=1)
    w_out = jnp.concatenate([params["w_out_deep"], params["w_out_wide"]], 0)
    return jax.nn.sigmoid(wd @ w_out + params["b_out"])


def reference_forward_bf16(x_wide, x_deep, params):
    """Reference with the same bf16 operand casts as the kernel."""
    bf = jnp.bfloat16
    emb_list = []
    for (col, _, _), table in zip(EMBEDDINGS_INPUT, params["emb_tables"]):
        idx = x_deep[:, DEEP_COLUMN_IDX[col]].astype(jnp.int32)
        emb_list.append(jnp.take(table, idx, axis=0).astype(bf))
    cont_idx = jnp.array([DEEP_COLUMN_IDX[c] for c in CONTINUOUS_COLS],
                         dtype=jnp.int32)
    cont = x_deep[:, cont_idx].astype(jnp.float32).astype(bf)
    deep_inp = jnp.concatenate(emb_list + [cont], axis=1)
    h1 = jnp.maximum(jnp.dot(deep_inp, params["w1"].astype(bf),
                             preferred_element_type=jnp.float32)
                     + params["b1"], 0.0)
    h2 = jnp.maximum(jnp.dot(h1.astype(bf), params["w2"].astype(bf),
                             preferred_element_type=jnp.float32)
                     + params["b2"], 0.0)
    logit = (jnp.sum(h2 * params["w_out_deep"][:, 0][None, :],
                     axis=1, keepdims=True)
             + jnp.sum(x_wide.astype(bf).astype(jnp.float32)
                       * params["w_out_wide"][:, 0][None, :],
                       axis=1, keepdims=True)
             + params["b_out"])
    return jax.nn.sigmoid(logit)


# ----------------------------------- main ------------------------------------
if __name__ == "__main__":
    key = jax.random.PRNGKey(0)
    k_p, k_w, k_cat_a, k_cat_b, k_cont = jax.random.split(key, 5)

    params = init_params(k_p)

    # wide input: [B, WIDE_DIM] float features
    x_wide = jax.random.normal(k_w, (BATCH, WIDE_DIM), dtype=jnp.float32)

    # deep input: [B, 4] -- cols 0,1 are integer category ids (stored as float,
    # exactly as the torch model expects), cols 2,3 are continuous features.
    cat_a = jax.random.randint(k_cat_a, (BATCH,), 0, EMBEDDINGS_INPUT[0][1])
    cat_b = jax.random.randint(k_cat_b, (BATCH,), 0, EMBEDDINGS_INPUT[1][1])
    cont = jax.random.normal(k_cont, (BATCH, 2), dtype=jnp.float32)
    x_deep = jnp.concatenate(
        [cat_a[:, None].astype(jnp.float32),
         cat_b[:, None].astype(jnp.float32),
         cont], axis=1)

    # TODO(synk): nn.Dropout layers are identity at inference time and are
    # intentionally omitted from the kernel.
    fwd = jax.jit(widedeep_forward, static_argnames=("tile_b",))
    out = fwd(x_wide, x_deep, params, tile_b=256)   # B=200 -> single grid step
    out = jax.block_until_ready(out)
    assert out.shape == (BATCH, N_CLASS)

    # kernel vs bit-matched (bf16-operand) reference: tight check
    ref_bf16 = reference_forward_bf16(x_wide, x_deep, params)
    assert jnp.allclose(out, ref_bf16, atol=2e-3, rtol=0), \
        float(jnp.max(jnp.abs(out - ref_bf16)))

    # kernel vs full-f32 reference (torch semantics): bf16-relaxed tolerance
    ref_f32 = reference_forward_f32(x_wide, x_deep, params)
    assert jnp.allclose(out, ref_f32, atol=3e-2, rtol=0), \
        float(jnp.max(jnp.abs(out - ref_f32)))

    print("KERNEL_OK")
</pallas_src>

<mosaic_0001>
module attributes {stable_mosaic.version = 11 : i64} {
  func.func @_widedeep_kernel(%arg0: i32, %arg1: memref<48x256xbf16, #tpu.memory_space<vmem>>, %arg2: memref<48x48xbf16, #tpu.memory_space<vmem>>, %arg3: memref<88x1xf32, #tpu.memory_space<vmem>>, %arg4: memref<1x256xf32, #tpu.memory_space<vmem>>) attributes {dimension_semantics = [#tpu.dimension_semantics<parallel>], iteration_bounds = array<i64: 1>, scalar_prefetch = 0 : i64, scratch_operands = 0 : i64, tpu.core_type = #tpu.core_type<tc>, window_params = [{transform_indices = @transform_0, window_bounds = array<i64: 48, 256>}, {pipeline_mode = #tpu.pipeline_mode<synchronous>, transform_indices = @transform_1, window_bounds = array<i64: 48, 48>}, {pipeline_mode = #tpu.pipeline_mode<synchronous>, transform_indices = @transform_2, window_bounds = array<i64: 88, 1>}, {transform_indices = @transform_3, window_bounds = array<i64: 1, 256>}]} {
    %c0 = arith.constant 0 : index
    %c0_0 = arith.constant 0 : index
    %0 = vector.load %arg1[%c0, %c0_0] : memref<48x256xbf16, #tpu.memory_space<vmem>>, vector<48x256xbf16>
    %c0_1 = arith.constant 0 : index
    %c0_2 = arith.constant 0 : index
    %1 = vector.load %arg2[%c0_1, %c0_2] : memref<48x48xbf16, #tpu.memory_space<vmem>>, vector<48x48xbf16>
    %c0_3 = arith.constant 0 : index
    %c0_4 = arith.constant 0 : index
    %2 = vector.load %arg3[%c0_3, %c0_4] : memref<88x1xf32, #tpu.memory_space<vmem>>, vector<88x1xf32>
    %3 = vector.extract_strided_slice %1 {offsets = [0, 0], sizes = [32, 48], strides = [1, 1]} : vector<48x48xbf16> to vector<32x48xbf16>
    %4 = vector.extract_strided_slice %1 {offsets = [32, 0], sizes = [16, 32], strides = [1, 1]} : vector<48x48xbf16> to vector<16x32xbf16>
    %5 = vector.extract_strided_slice %2 {offsets = [0, 0], sizes = [32, 1], strides = [1, 1]} : vector<88x1xf32> to vector<32x1xf32>
    %6 = vector.extract_strided_slice %2 {offsets = [32, 0], sizes = [16, 1], strides = [1, 1]} : vector<88x1xf32> to vector<16x1xf32>
    %7 = vector.extract_strided_slice %2 {offsets = [48, 0], sizes = [16, 1], strides = [1, 1]} : vector<88x1xf32> to vector<16x1xf32>
    %8 = vector.extract_strided_slice %2 {offsets = [64, 0], sizes = [16, 1], strides = [1, 1]} : vector<88x1xf32> to vector<16x1xf32>
    %9 = vector.extract_strided_slice %2 {offsets = [80, 0], sizes = [1, 1], strides = [1, 1]} : vector<88x1xf32> to vector<1x1xf32>
    %cst = arith.constant dense<0.000000e+00> : vector<32x256xf32>
    %10 = tpu.matmul %3, %0, %cst {dimension_numbers = #tpu.dot_dimension_numbers<[1], [0], [0], [1], [0, 0, 1, 1], [], []>} : vector<32x48xbf16>, vector<48x256xbf16>, vector<32x256xf32> -> vector<32x256xf32>
    %11 = vector.broadcast %5 : vector<32x1xf32> to vector<32x256xf32>
    %12 = arith.addf %10, %11 : vector<32x256xf32>
    %cst_5 = arith.constant 0.000000e+00 : f32
    %13 = vector.broadcast %cst_5 : f32 to vector<32x256xf32>
    %14 = arith.maximumf %12, %13 : vector<32x256xf32>
    %15 = arith.truncf %14 : vector<32x256xf32> to vector<32x256xbf16>
    %cst_6 = arith.constant dense<0.000000e+00> : vector<16x256xf32>
    %16 = tpu.matmul %4, %15, %cst_6 {dimension_numbers = #tpu.dot_dimension_numbers<[1], [0], [0], [1], [0, 0, 1, 1], [], []>} : vector<16x32xbf16>, vector<32x256xbf16>, vector<16x256xf32> -> vector<16x256xf32>
    %17 = vector.broadcast %6 : vector<16x1xf32> to vector<16x256xf32>
    %18 = arith.addf %16, %17 : vector<16x256xf32>
    %cst_7 = arith.constant 0.000000e+00 : f32
    %19 = vector.broadcast %cst_7 : f32 to vector<16x256xf32>
    %20 = arith.maximumf %18, %19 : vector<16x256xf32>
    %21 = vector.extract_strided_slice %0 {offsets = [0, 0], sizes = [16, 256], strides = [1, 1]} : vector<48x256xbf16> to vector<16x256xbf16>
    %22 = arith.extf %21 : vector<16x256xbf16> to vector<16x256xf32>
    %23 = vector.broadcast %7 : vector<16x1xf32> to vector<16x256xf32>
    %24 = arith.mulf %20, %23 : vector<16x256xf32>
    %cst_8 = arith.constant dense<0.000000e+00> : vector<256xf32>
    %25 = vector.multi_reduction <add>, %24, %cst_8 [0] : vector<16x256xf32> to vector<256xf32>
    %26 = vector.shape_cast %25 : vector<256xf32> to vector<1x256xf32>
    %27 = vector.broadcast %8 : vector<16x1xf32> to vector<16x256xf32>
    %28 = arith.mulf %22, %27 : vector<16x256xf32>
    %cst_9 = arith.constant dense<0.000000e+00> : vector<256xf32>
    %29 = vector.multi_reduction <add>, %28, %cst_9 [0] : vector<16x256xf32> to vector<256xf32>
    %30 = vector.shape_cast %29 : vector<256xf32> to vector<1x256xf32>
    %31 = arith.addf %26, %30 : vector<1x256xf32>
    %32 = vector.broadcast %9 : vector<1x1xf32> to vector<1x256xf32>
    %33 = arith.addf %31, %32 : vector<1x256xf32>
    %34 = arith.negf %33 : vector<1x256xf32>
    %35 = math.exp %34 : vector<1x256xf32>
    %cst_10 = arith.constant 1.000000e+00 : f32
    %36 = vector.broadcast %cst_10 : f32 to vector<1x256xf32>
    %37 = arith.addf %36, %35 : vector<1x256xf32>
    %38 = arith.divf %36, %37 : vector<1x256xf32>
    %c0_11 = arith.constant 0 : index
    %c0_12 = arith.constant 0 : index
    %39 = vector.load %arg4[%c0_11, %c0_12] : memref<1x256xf32, #tpu.memory_space<vmem>>, vector<1x256xf32>
    tpu.vector_store %arg4[%c0_11, %c0_12], %38 {strides = array<i32>} : memref<1x256xf32, #tpu.memory_space<vmem>>, vector<1x256xf32>,
    return
  }
  func.func @transform_0(%arg0: i32) -> (i32, i32) {
    %c0_i32 = arith.constant 0 : i32
    %c0_i32_0 = arith.constant 0 : i32
    return %c0_i32, %arg0 : i32, i32
  }
  func.func @transform_1(%arg0: i32) -> (i32, i32) {
    %c0_i32 = arith.constant 0 : i32
    %c0_i32_0 = arith.constant 0 : i32
    %c0_i32_1 = arith.constant 0 : i32
    return %c0_i32, %c0_i32_0 : i32, i32
  }
  func.func @transform_2(%arg0: i32) -> (i32, i32) {
    %c0_i32 = arith.constant 0 : i32
    %c0_i32_0 = arith.constant 0 : i32
    %c0_i32_1 = arith.constant 0 : i32
    return %c0_i32, %c0_i32_0 : i32, i32
  }
  func.func @transform_3(%arg0: i32) -> (i32, i32) {
    %c0_i32 = arith.constant 0 : i32
    %c0_i32_0 = arith.constant 0 : i32
    return %c0_i32, %arg0 : i32, i32
  }
}

</mosaic_0001>

<bundles_post_ra>
// kernel: widedeep_forward.1
= control target key start
LH: loop header
LB: loop body
LE: loop exit
PB: predicated region body
PF: predicated region fallthrough
CT: control target
= control target key end

     0   :  { %v381_v2 = vmov 0   ;;  %vm98_vm0 = vcmask 392192   ;;  %vm185_vm1 = vcmask 261120   ;;  %s486_s0 = inlined_call_operand.vmem [shape: bf16[48,256], index: 0, kind: input, shape index: {}]   ;;  %s487_s1 = inlined_call_operand.vmem [shape: bf16[48,48], index: 1, kind: input, shape index: {}]   ;;  %s488_s2 = inlined_call_operand.vmem [shape: f32[88,1], index: 2, kind: input, shape index: {}]   ;;  %s489_s3 = inlined_call_operand.vmem [shape: f32[1,256], index: 3, kind: output, shape index: {}]  }
   0x1   :  { %v406_v0 = vld [vmem:[%s486_s0] sm:$0xff]  ;;  %v411_v1 = vld [vmem:[%s486_s0 + $0x8] sm:$0xff]  ;;  %137 = vmatprep.mubr.bf16.mxu0 %v381_v2  ;;  %361 = vset.pattern.permute.xlu1 %v381_v2  ;;  %v364_v5 = vld [vmem:[%s486_s0 + $0x14] ss:$8 sps:$4 sm:$0xff]  }
   0x2   :  { %v347_v3 = vcombine.high %v406_v0, %v411_v1  ;;  %v346_v4 = vcombine.low %v406_v0, %v411_v1  ;;  %360 = vset.pattern.permute.xlu0 %v381_v2  ;;  %221 = vmatprep.mubr.bf16.mxu1 %v381_v2  ;;  %v366_v6 = vld [vmem:[%s486_s0 + $0x10] ss:$8 sps:$4 sm:$0xff]   ;;  %v367_v7 = vld [vmem:[%s486_s0 + $0x24] ss:$8 sps:$4 sm:$0xff]   ;;  %v369_v12 = vld [vmem:[%s486_s0 + $0x20] ss:$8 sps:$4 sm:$0xff]   ;;  %v238_v30 = vunpack.c.l.bf16 %v411_v1  ;;  %v239_v31 = vunpack.c.h.bf16 %v411_v1 }
   0x3   :  { %v29_v8 = vld [vmem:[%s488_s2 + $0x10] sm:$0xff]  ;;  %v27_v9 = vld [vmem:[%s488_s2] sm:$0xff]  ;;  %v30_v10 = vld [vmem:[%s488_s2 + $0x18] sm:$0xff]  ;;  %v236_v32 = vunpack.c.l.bf16 %v406_v0  ;;  %v237_v33 = vunpack.c.h.bf16 %v406_v0 }
   0x4   :  { %105 = vmatprep.subr.bf16.mxu0 %v347_v3  ;;  %50 = vperm.xlu1 %361, %v29_v8   ;;  %v28_v11 = vld [vmem:[%s488_s2 + $0x8] sm:$0xff]  ;;  %v370_v13 = vld [vmem:[%s487_s1] sm:$0xff]   ;;  %v34_v16 = vld [vmem:[%s488_s2 + $0x38] sm:$0xff] }
   0x5   :  { %106 = vmatpush1.bf16.msra.mxu0 %v346_v4  ;;  %40 = vperm.xlu0 %360, %v27_v9   ;;  %v32_v14 = vld [vmem:[%s488_s2 + $0x28] sm:$0xff]  ;;  %v31_v15 = vld [vmem:[%s488_s2 + $0x20] sm:$0xff]  ;;  %v33_v17 = vld [vmem:[%s488_s2 + $0x30] sm:$0xff] }
   0x6   :  { %107 = vmatprep.subr.bf16.mxu0 %v364_v5  ;;  %v371_v18 = vld [vmem:[%s487_s1 + $0x8] sm:$0xff]   ;;  %v35_v20 = vld [vmem:[%s488_s2 + $0x40] sm:$0xff]  ;;  %v37_v21 = vld [vmem:[%s488_s2 + $0x50] sm:$0xff] }
   0x7   :  { %v36_v19 = vld [vmem:[%s488_s2 + $0x48] sm:$0xff] }
   0x8   :  { %55 = vperm.xlu1 %361, %v30_v10  }
   0x9   :  { %108 = vmatpush1.bf16.msra.mxu0 %v366_v6  ;;  %45 = vperm.xlu0 %360, %v28_v11   ;;  %v372_v6 = vld [vmem:[%s487_s1 + $0x10] sm:$0xff]  }
   0xa   :  { %109 = vmatprep.subr.bf16.mxu0 %v367_v7 }
   0xc   :  { %177 = vperm.xlu1 %361, %v32_v14  }
   0xd   :  { %110 = vmatpush1.bf16.msra.mxu0 %v369_v12  ;;  %172 = vperm.xlu0 %360, %v31_v15  }
  0x10   :  { %352 = vmatmul.mubr.msk.bf16.vlgmr.msra.gmra.mrb[0].mxu0 %vm98_vm0, %v370_v13  ;;  %247 = vperm.xlu1 %361, %v34_v16  }
  0x11   :  { %147 = vmatprep.mubr.bf16.mxu0 %v381_v2  ;;  %242 = vperm.xlu0 %360, %v33_v17  }
  0x14   :  { %275 = vperm.xlu1 %361, %v36_v19  }
  0x15   :  { %270 = vperm.xlu0 %360, %v35_v20  }
  0x18   :  { %353 = vmatmul.mubr.msk.bf16.gmra.mrb[4].mxu0 %vm98_vm0, %v371_v18 }
  0x19   :  { %300 = vperm.xlu0 %360, %v37_v21  }
  0x83   :  { %v51_v22 = vpop.permute.xlu1 %50 }
  0x84   :  { %v41_v23 = vpop.permute.xlu0 %40 }
  0x87   :  { %v56_v24 = vpop.permute.xlu1 %55 }
  0x88   :  { %v46_v25 = vpop.permute.xlu0 %45 }
  0x8b   :  { %v178_v26 = vpop.permute.xlu1 %177 }
  0x8c   :  { %v173_v27 = vpop.permute.xlu0 %172 }
  0x8f   :  { %v468_v28 = vpop.permute.xlu1 %247 }
  0x90   :  { %v470_v29 = vpop.permute.xlu0 %242 }
  0x93   :  { %v276_v34 = vpop.permute.xlu1 %275 }
  0x94   :  { %v271_v35 = vpop.permute.xlu0 %270  ;;  %v280_v36 = vmul.f32 %v276_v34, %v238_v30  ;;  %v281_v37 = vmul.f32 %v276_v34, %v239_v31 }
  0x95   :  { %v278_v38 = vmul.f32 %v271_v35, %v236_v32  ;;  %v279_v39 = vmul.f32 %v271_v35, %v237_v33 }
  0x97   :  { %v282_v40 = vadd.f32 %v280_v36, %v278_v38  ;;  %v289_v41 = vadd.f32 %v281_v37, %v279_v39 }
  0x99   :  { %v283_v8 = vrot.slane %v282_v40, 4  ;;  %v290_v11 = vrot.slane %v289_v41, 4 }
  0x9b   :  { %v284_v19 = vadd.f32 %v283_v8, %v282_v40  ;;  %v291_v21 = vadd.f32 %v290_v11, %v289_v41 }
  0x9d   :  { %v285_v31 = vrot.slane %v284_v19, 2  ;;  %v292_v32 = vrot.slane %v291_v21, 2 }
  0x9f   :  { %v286_v36 = vadd.f32 %v285_v31, %v284_v19  ;;  %v293_v37 = vadd.f32 %v292_v32, %v291_v21 }
  0xa1   :  { %v287_v41 = vrot.slane %v286_v36, 1 }
  0xe3   :  { %v139_v42 = vpop.f32.mrb[0].mxu0 }
  0xe4   :  { %v140_v43 = vadd.f32 %v139_v42, %v41_v23  ;;  %v141_v44 = vpop.f32.mrb[1].mxu0 }
  0xe5   :  { %v142_v45 = vadd.f32 %v141_v44, %v41_v23  ;;  %v143_v46 = vpop.f32.mrb[2].mxu0 }
  0xe6   :  { %v144_v47 = vadd.f32 %v143_v46, %v46_v25  ;;  %v145_v48 = vpop.f32.mrb[3].mxu0  ;;  %v158_v50 = vmax.f32 %v140_v43, 0.0  ;;  %v294_v43 = vrot.slane %v293_v37, 1  ;;  %v288_v46 = vadd.f32 %v287_v41, %v286_v36 }
  0xe7   :  { %v146_v49 = vadd.f32 %v145_v48, %v46_v25  ;;  %v159_v52 = vmax.f32 %v142_v45, 0.0 }
  0xe8   :  { %v160_v51 = vmax.f32 %v144_v47, 0.0  ;;  %v295_v47 = vadd.f32 %v294_v43, %v293_v37 }
  0xe9   :  { %v161_v53 = vmax.f32 %v146_v49, 0.0 }
  0xea   :  { %v166_v54 = vpack.c.bf16 %v160_v51, %v158_v50  ;;  %v301_v50 = vpop.permute.xlu0 %300 }
  0xeb   :  { %v149_v55 = vpop.f32.mrb[4].mxu0  ;;  %v167_v56 = vpack.c.bf16 %v161_v53, %v159_v52 }
  0xec   :  { %v150_v57 = vadd.f32 %v149_v55, %v51_v22  ;;  %v151_v58 = vpop.f32.mrb[5].mxu0 }
  0xed   :  { %v152_v59 = vadd.f32 %v151_v58, %v51_v22  ;;  %v153_v60 = vpop.f32.mrb[6].mxu0  ;;  %189 = vmatprep.subr.bf16.mxu1 %v167_v56 }
  0xee   :  { %v154_v61 = vadd.f32 %v153_v60, %v56_v24  ;;  %v155_v62 = vpop.f32.mrb[7].mxu0  ;;  %190 = vmatpush1.bf16.msra.mxu1 %v166_v54  ;;  %v162_v0 = vmax.f32 %v150_v57, 0.0  ;;  %v382_v60 = vmov 1966171168  }
  0xef   :  { %v156_v63 = vadd.f32 %v155_v62, %v56_v24  ;;  %v163_v2 = vmax.f32 %v152_v59, 0.0  ;;  %v323_v62 = vlaneseq }
  0xf0   :  { %v164_v1 = vmax.f32 %v154_v61, 0.0  ;;  %v321_v61 = vunpack.c.l.s4 %v382_v60 }
  0xf1   :  { %v165_v3 = vmax.f32 %v156_v63, 0.0  ;;  %vm337_vm2 = vcmp.lt.s32.totalorder %v323_v62, 256 }
  0xf2   :  { %v168_v4 = vpack.c.bf16 %v164_v1, %v162_v0  ;;  %v322_v63 = vunpack.c.0.s8 %v321_v61  ;;  %v324_v0 = vshrl.u32 %v323_v62, 7 }
  0xf3   :  { %v169_v5 = vpack.c.bf16 %v165_v3, %v163_v2 }
  0xf4   :  { %v325_v2 = vsub.s32 %v322_v63, %v324_v0 }
  0xf5   :  { %191 = vmatprep.subr.bf16.mxu1 %v169_v5 }
  0xf6   :  { %192 = vmatpush1.bf16.msra.mxu1 %v168_v4 }
  0xf9   :  { %355 = vmatmul.mubr.msk.bf16.vlgmr.msra.gmra.mrb[0].mxu1 %vm185_vm1, %v372_v6 }
 0x1cc   :  { %v223_v7 = vpop.f32.mrb[0].mxu1 }
 0x1cd   :  { %v224_v9 = vadd.f32 %v223_v7, %v173_v27  ;;  %v225_v10 = vpop.f32.mrb[1].mxu1 }
 0x1ce   :  { %v226_v12 = vadd.f32 %v225_v10, %v173_v27  ;;  %v227_v13 = vpop.f32.mrb[2].mxu1 }
 0x1cf   :  { %v232_v14 = vmax.f32 %v224_v9, 0.0  ;;  %v228_v15 = vadd.f32 %v227_v13, %v178_v26  ;;  %v229_v16 = vpop.f32.mrb[3].mxu1 }
 0x1d0   :  { %v233_v17 = vmax.f32 %v226_v12, 0.0  ;;  %v230_v18 = vadd.f32 %v229_v16, %v178_v26 }
 0x1d1   :  { %v234_v20 = vmax.f32 %v228_v15, 0.0  ;;  %v250_v23 = vmul.f32 %v470_v29, %v232_v14 }
 0x1d2   :  { %v235_v22 = vmax.f32 %v230_v18, 0.0  ;;  %v251_v25 = vmul.f32 %v470_v29, %v233_v17 }
 0x1d3   :  { %v252_v24 = vmul.f32 %v468_v28, %v234_v20 }
 0x1d4   :  { %v253_v30 = vmul.f32 %v468_v28, %v235_v22 }
 0x1d5   :  { %v254_v27 = vadd.f32 %v252_v24, %v250_v23 }
 0x1d6   :  { %v261_v33 = vadd.f32 %v253_v30, %v251_v25 }
 0x1d7   :  { %v255_v34 = vrot.slane %v254_v27, 4 }
 0x1d8   :  { %v262_v35 = vrot.slane %v261_v33, 4 }
 0x1d9   :  { %v256_v26 = vadd.f32 %v255_v34, %v254_v27 }
 0x1da   :  { %v263_v38 = vadd.f32 %v262_v35, %v261_v33 }
 0x1db   :  { %v257_v39 = vrot.slane %v256_v26, 2 }
 0x1dc   :  { %v264_v40 = vrot.slane %v263_v38, 2 }
 0x1dd   :  { %v258_v42 = vadd.f32 %v257_v39, %v256_v26 }
 0x1de   :  { %v265_v44 = vadd.f32 %v264_v40, %v263_v38 }
 0x1df   :  { %v259_v45 = vrot.slane %v258_v42, 1 }
 0x1e0   :  { %v266_v29 = vrot.slane %v265_v44, 1 }
 0x1e1   :  { %v260_v28 = vadd.f32 %v259_v45, %v258_v42 }
 0x1e2   :  { %v267_v48 = vadd.f32 %v266_v29, %v265_v44 }
 0x1e3   :  { %v296_v49 = vadd.f32 %v288_v46, %v260_v28 }
 0x1e4   :  { %v297_v51 = vadd.f32 %v295_v47, %v267_v48 }
 0x1e5   :  { %v303_v52 = vadd.f32 %v301_v50, %v296_v49 }
 0x1e6   :  { %v304_v53 = vadd.f32 %v301_v50, %v297_v51 }
 0x1e7   :  { %v356_v54 = vmul.f32 -1.442695, %v303_v52 }
 0x1e8   :  { %v357_v55 = vmul.f32 -1.442695, %v304_v53 }
 0x1e9   :  { %373 = vpow2.f32 %v356_v54 }
 0x1ea   :  { %375 = vpow2.f32 %v357_v55 }
 0x1f3   :  { %v374_v56 = vpop.eup %373 }
 0x1f4   :  { %v376_v57 = vpop.eup %375  ;;  %v311_v58 = vadd.f32 1.0, %v374_v56 }
 0x1f5   :  { %v312_v59 = vadd.f32 1.0, %v376_v57 }
 0x1f6   :  { %377 = vrcp.f32 %v311_v58 }
 0x1f7   :  { %379 = vrcp.f32 %v312_v59 }
 0x200   :  { %v378_v1 = vpop.eup %377 }
 0x201   :  { %v380_v3 = vpop.eup %379 }
 0x202   :  { %v319_v4 = vcombine.low %v378_v1, %v380_v3 }
 0x204   :  { %v326_v5 = vrot.slane %v319_v4, %v325_v2 }
 0x206   :  { %v333_v6 = vrot.slane %v326_v5, %v325_v2 }
 0x208   :  { %339 = vst.msk [vmem:[%s489_s3] sm:$0x3] %vm337_vm2, %v333_v6 }

</bundles_post_ra>
